<compile_context>
chip_gen: v7x
topology: tpu7x:2x2x1
jax: 0.10.0
libtpu: 0.0.40
codegen_flags: <defaults>
</compile_context>

<pallas_src>
import jax
import jax.numpy as jnp
from jax.experimental import pallas as pl
from jax.experimental.pallas import tpu as pltpu


def _tv_kernel(x_ref, part_ref, prev_ref):
    # x_ref:    (P, TH, W) block: row-tile `j` of P whole image planes.
    # part_ref: (1, 2, 128) partial sums for this plane block, accumulated
    #           across row tiles: sublane 0 = h-direction, sublane 1 = w-dir.
    # prev_ref: (P, 1, W) VMEM scratch carrying the previous row tile's last
    #           row (h-direction seam between consecutive row tiles).
    j = pl.program_id(1)
    x = x_ref[...].astype(jnp.float32)
    _, th, w = x.shape

    @pl.when(j == 0)
    def _():
        part_ref[...] = jnp.zeros_like(part_ref)
        # Make the j==0 "seam" diff exactly zero (no previous tile exists).
        prev_ref[...] = x[:, 0:1, :]

    # Seam between this row tile and the previous one (zero at j == 0).
    seam = x[:, 0:1, :] - prev_ref[...]
    h_part = jnp.sum(seam * seam)

    # Within-tile h-direction diffs.
    if th > 1:
        dh = x[:, 1:, :] - x[:, :-1, :]
        h_part = h_part + jnp.sum(dh * dh)

    # Carry this tile's last row for the next row tile's seam.
    prev_ref[...] = x[:, th - 1:th, :]

    # w-direction diffs are fully contained within a row tile.
    if w > 1:
        dw = x[:, :, 1:] - x[:, :, :-1]
        w_part = jnp.sum(dw * dw)
    else:
        w_part = jnp.float32(0.0)

    # Lane-dense (1, 2, 128) accumulate: sublane 0 <- h_part, sublane 1 <- w_part.
    row = jax.lax.broadcasted_iota(jnp.int32, part_ref.shape, 1)
    part_ref[...] += jnp.where(row == 0, h_part, w_part)


def _largest_divisor_leq(n: int, target: int) -> int:
    target = max(1, min(n, target))
    for d in range(target, 0, -1):
        if n % d == 0:
            return d
    return 1


def _largest_mult8_divisor_leq(n: int, target: int):
    """Largest d <= target with d % 8 == 0 and n % d == 0, or None."""
    d = (min(n, target) // 8) * 8
    while d >= 8:
        if n % d == 0:
            return d
        d -= 8
    return None


def tv_loss(x: jax.Array, tvloss_weight: float = 1.0,
            block_planes=None, block_rows=None) -> jax.Array:
    """TV loss matching PyTorch TVLoss.forward semantics. x: (N, C, H, W)."""
    n, c, h, w = x.shape
    nc = n * c
    x_flat = x.reshape(nc, h, w)

    # --- tile sizing (all budgets in padded f32 bytes, the in-kernel dtype) ---
    lane_w = pl.cdiv(w, 128) * 128
    sub_h = pl.cdiv(h, 8) * 8
    plane_bytes = sub_h * lane_w * 4
    target_bytes = 2 * 1024 * 1024  # per input block; intermediates + double
    #                                 buffering keep total well under 32 MiB.

    if block_rows is not None:
        th = int(block_rows)
        if th != h and (th % 8 != 0 or h % th != 0):
            raise ValueError("block_rows must equal H or be a multiple of 8 "
                             "that divides H")
    elif plane_bytes <= target_bytes:
        th = h  # whole plane fits comfortably -> no row tiling needed.
    else:
        cand = _largest_mult8_divisor_leq(h, max(8, target_bytes // (lane_w * 4)))
        th = cand if cand is not None else h  # see TODO(synk) above.
    num_row_blocks = h // th

    tile_bytes = (pl.cdiv(th, 8) * 8) * lane_w * 4
    if block_planes is None:
        block_planes = max(1, target_bytes // tile_bytes)
    p = _largest_divisor_leq(nc, int(block_planes))
    num_plane_blocks = nc // p

    parts = pl.pallas_call(
        _tv_kernel,
        out_shape=jax.ShapeDtypeStruct((num_plane_blocks, 2, 128), jnp.float32),
        grid_spec=pltpu.PrefetchScalarGridSpec(
            num_scalar_prefetch=0,
            grid=(num_plane_blocks, num_row_blocks),
            in_specs=[pl.BlockSpec((p, th, w), lambda i, j: (i, j, 0))],
            out_specs=pl.BlockSpec((1, 2, 128), lambda i, j: (i, 0, 0)),
            scratch_shapes=[pltpu.VMEM((p, 1, w), jnp.float32)],
        ),
        compiler_params=pltpu.CompilerParams(
            # plane blocks are independent -> both TCs on v7x; row axis carries
            # the seam scratch + output accumulator -> sequential.
            dimension_semantics=("parallel", "arbitrary"),
            vmem_limit_bytes=32 * 1024 * 1024,
        ),
    )(x_flat)

    h_sum = jnp.sum(parts[:, 0, 0])
    w_sum = jnp.sum(parts[:, 1, 0])

    # NOTE: matches PyTorch exactly -- count_h / count_w are 0 when h == 1 or
    # w == 1 (same division-by-zero hazard as the original module).
    count_h = c * (h - 1) * w
    count_w = c * h * (w - 1)
    return tvloss_weight * 2.0 * (h_sum / count_h + w_sum / count_w) / n


def tv_loss_ref(x: jax.Array, tvloss_weight: float = 1.0) -> jax.Array:
    """Pure-JAX reference for correctness checking."""
    n, c, h, w = x.shape
    count_h = c * (h - 1) * w
    count_w = c * h * (w - 1)
    xf = x.astype(jnp.float32)
    h_tv = jnp.sum((xf[:, :, 1:, :] - xf[:, :, : h - 1, :]) ** 2)
    w_tv = jnp.sum((xf[:, :, :, 1:] - xf[:, :, :, : w - 1]) ** 2)
    return tvloss_weight * 2.0 * (h_tv / count_h + w_tv / count_w) / n


if __name__ == "__main__":
    key = jax.random.PRNGKey(0)
    x = jax.random.normal(key, (2, 4, 16, 16), dtype=jnp.float32)
    ref = jax.block_until_ready(tv_loss_ref(x, tvloss_weight=1.0))

    # Default path: whole planes, planes batched into one block.
    out = jax.block_until_ready(tv_loss(x, tvloss_weight=1.0))
    assert jnp.allclose(out, ref, rtol=1e-5, atol=1e-5), (out, ref)

    # Multi plane-block "parallel partial sums" path.
    out2 = jax.block_until_ready(tv_loss(x, tvloss_weight=0.5, block_planes=2))
    ref2 = jax.block_until_ready(tv_loss_ref(x, tvloss_weight=0.5))
    assert jnp.allclose(out2, ref2, rtol=1e-5, atol=1e-5), (out2, ref2)

    # Row-tiled path (exercises the h-direction seam carry across row tiles).
    out3 = jax.block_until_ready(tv_loss(x, tvloss_weight=1.0, block_rows=8))
    assert jnp.allclose(out3, ref, rtol=1e-5, atol=1e-5), (out3, ref)

    # Combined: multiple plane blocks x multiple row tiles.
    out4 = jax.block_until_ready(
        tv_loss(x, tvloss_weight=1.0, block_planes=2, block_rows=8))
    assert jnp.allclose(out4, ref, rtol=1e-5, atol=1e-5), (out4, ref)

    # Odd, non-(8,128)-aligned spatial shape (padding correctness).
    y = jax.random.normal(jax.random.PRNGKey(1), (2, 3, 13, 10), dtype=jnp.float32)
    out5 = jax.block_until_ready(tv_loss(y, tvloss_weight=2.0))
    ref5 = jax.block_until_ready(tv_loss_ref(y, tvloss_weight=2.0))
    assert jnp.allclose(out5, ref5, rtol=1e-5, atol=1e-5), (out5, ref5)

    print("KERNEL_OK")
</pallas_src>

<mosaic_0001>
module attributes {stable_mosaic.version = 11 : i64} {
  func.func @_tv_kernel(%arg0: i32, %arg1: i32, %arg2: memref<8x16x16xf32, #tpu.memory_space<vmem>>, %arg3: memref<1x2x128xf32, #tpu.memory_space<vmem>>, %arg4: memref<8x1x16xf32, #tpu.memory_space<vmem>>) attributes {dimension_semantics = [#tpu.dimension_semantics<parallel>, #tpu.dimension_semantics<arbitrary>], iteration_bounds = array<i64: 1, 1>, scalar_prefetch = 0 : i64, scratch_operands = 1 : i64, tpu.core_type = #tpu.core_type<tc>, window_params = [{transform_indices = @transform_0, window_bounds = array<i64: 8, 16, 16>}, {transform_indices = @transform_1, window_bounds = array<i64: 1, 2, 128>}]} {
    %c0 = arith.constant 0 : index
    %c0_0 = arith.constant 0 : index
    %c0_1 = arith.constant 0 : index
    %0 = vector.load %arg2[%c0, %c0_0, %c0_1] : memref<8x16x16xf32, #tpu.memory_space<vmem>>, vector<8x16x16xf32>
    %c0_i32 = arith.constant 0 : i32
    %1 = arith.cmpi eq, %arg1, %c0_i32 : i32
    %2 = arith.extui %1 : i1 to i32
    %c0_i32_2 = arith.constant 0 : i32
    %3 = arith.cmpi ne, %2, %c0_i32_2 : i32
    scf.if %3 {
      %cst_18 = arith.constant 0.000000e+00 : f32
      %40 = vector.broadcast %cst_18 : f32 to vector<1x2x128xf32>
      %c0_19 = arith.constant 0 : index
      %c0_20 = arith.constant 0 : index
      %c0_21 = arith.constant 0 : index
      %41 = vector.load %arg3[%c0_19, %c0_20, %c0_21] : memref<1x2x128xf32, #tpu.memory_space<vmem>>, vector<1x2x128xf32>
      tpu.vector_store %arg3[%c0_19, %c0_20, %c0_21], %40 {strides = array<i32>} : memref<1x2x128xf32, #tpu.memory_space<vmem>>, vector<1x2x128xf32>,
      %42 = vector.extract_strided_slice %0 {offsets = [0, 0, 0], sizes = [8, 1, 16], strides = [1, 1, 1]} : vector<8x16x16xf32> to vector<8x1x16xf32>
      %c0_22 = arith.constant 0 : index
      %c0_23 = arith.constant 0 : index
      %c0_24 = arith.constant 0 : index
      %43 = vector.load %arg4[%c0_22, %c0_23, %c0_24] : memref<8x1x16xf32, #tpu.memory_space<vmem>>, vector<8x1x16xf32>
      tpu.vector_store %arg4[%c0_22, %c0_23, %c0_24], %42 {strides = array<i32>} : memref<8x1x16xf32, #tpu.memory_space<vmem>>, vector<8x1x16xf32>,
    } else {
    }
    %4 = vector.extract_strided_slice %0 {offsets = [0, 0, 0], sizes = [8, 1, 16], strides = [1, 1, 1]} : vector<8x16x16xf32> to vector<8x1x16xf32>
    %c0_3 = arith.constant 0 : index
    %c0_4 = arith.constant 0 : index
    %c0_5 = arith.constant 0 : index
    %5 = vector.load %arg4[%c0_3, %c0_4, %c0_5] : memref<8x1x16xf32, #tpu.memory_space<vmem>>, vector<8x1x16xf32>
    %6 = arith.subf %4, %5 : vector<8x1x16xf32>
    %7 = arith.mulf %6, %6 : vector<8x1x16xf32>
    %8 = vector.shape_cast %7 : vector<8x1x16xf32> to vector<1x8x1x16xf32>
    %cst = arith.constant dense<0.000000e+00> : vector<1xf32>
    %9 = vector.multi_reduction <add>, %8, %cst [1, 2, 3] : vector<1x8x1x16xf32> to vector<1xf32>
    %10 = vector.shape_cast %9 : vector<1xf32> to vector<1x1x1x1xf32>
    %11 = vector.extract %10[0, 0, 0, 0] : f32 from vector<1x1x1x1xf32>
    %12 = vector.extract_strided_slice %0 {offsets = [0, 1, 0], sizes = [8, 15, 16], strides = [1, 1, 1]} : vector<8x16x16xf32> to vector<8x15x16xf32>
    %13 = vector.extract_strided_slice %0 {offsets = [0, 0, 0], sizes = [8, 15, 16], strides = [1, 1, 1]} : vector<8x16x16xf32> to vector<8x15x16xf32>
    %14 = arith.subf %12, %13 : vector<8x15x16xf32>
    %15 = arith.mulf %14, %14 : vector<8x15x16xf32>
    %16 = vector.shape_cast %15 : vector<8x15x16xf32> to vector<1x8x15x16xf32>
    %cst_6 = arith.constant dense<0.000000e+00> : vector<1xf32>
    %17 = vector.multi_reduction <add>, %16, %cst_6 [1, 2, 3] : vector<1x8x15x16xf32> to vector<1xf32>
    %18 = vector.shape_cast %17 : vector<1xf32> to vector<1x1x1x1xf32>
    %19 = vector.extract %18[0, 0, 0, 0] : f32 from vector<1x1x1x1xf32>
    %20 = arith.addf %11, %19 : f32
    %21 = vector.extract_strided_slice %0 {offsets = [0, 15, 0], sizes = [8, 1, 16], strides = [1, 1, 1]} : vector<8x16x16xf32> to vector<8x1x16xf32>
    %c0_7 = arith.constant 0 : index
    %c0_8 = arith.constant 0 : index
    %c0_9 = arith.constant 0 : index
    %22 = vector.load %arg4[%c0_7, %c0_8, %c0_9] : memref<8x1x16xf32, #tpu.memory_space<vmem>>, vector<8x1x16xf32>
    tpu.vector_store %arg4[%c0_7, %c0_8, %c0_9], %21 {strides = array<i32>} : memref<8x1x16xf32, #tpu.memory_space<vmem>>, vector<8x1x16xf32>,
    %23 = vector.extract_strided_slice %0 {offsets = [0, 0, 1], sizes = [8, 16, 15], strides = [1, 1, 1]} : vector<8x16x16xf32> to vector<8x16x15xf32>
    %24 = vector.extract_strided_slice %0 {offsets = [0, 0, 0], sizes = [8, 16, 15], strides = [1, 1, 1]} : vector<8x16x16xf32> to vector<8x16x15xf32>
    %25 = arith.subf %23, %24 : vector<8x16x15xf32>
    %26 = arith.mulf %25, %25 : vector<8x16x15xf32>
    %27 = vector.shape_cast %26 : vector<8x16x15xf32> to vector<1x8x16x15xf32>
    %cst_10 = arith.constant dense<0.000000e+00> : vector<1xf32>
    %28 = vector.multi_reduction <add>, %27, %cst_10 [1, 2, 3] : vector<1x8x16x15xf32> to vector<1xf32>
    %29 = vector.shape_cast %28 : vector<1xf32> to vector<1x1x1x1xf32>
    %30 = vector.extract %29[0, 0, 0, 0] : f32 from vector<1x1x1x1xf32>
    %31 = tpu.iota {dimensions = array<i32: 1>} : vector<1x2x128xi32>
    %c0_11 = arith.constant 0 : index
    %c0_12 = arith.constant 0 : index
    %c0_13 = arith.constant 0 : index
    %32 = vector.load %arg3[%c0_11, %c0_12, %c0_13] : memref<1x2x128xf32, #tpu.memory_space<vmem>>, vector<1x2x128xf32>
    %c0_i32_14 = arith.constant 0 : i32
    %33 = vector.broadcast %c0_i32_14 : i32 to vector<1x2x128xi32>
    %34 = arith.cmpi eq, %31, %33 : vector<1x2x128xi32>
    %35 = vector.broadcast %20 : f32 to vector<1x2x128xf32>
    %36 = vector.broadcast %30 : f32 to vector<1x2x128xf32>
    %37 = arith.select %34, %35, %36 : vector<1x2x128xi1>, vector<1x2x128xf32>
    %38 = arith.addf %32, %37 : vector<1x2x128xf32>
    %c0_15 = arith.constant 0 : index
    %c0_16 = arith.constant 0 : index
    %c0_17 = arith.constant 0 : index
    %39 = vector.load %arg3[%c0_15, %c0_16, %c0_17] : memref<1x2x128xf32, #tpu.memory_space<vmem>>, vector<1x2x128xf32>
    tpu.vector_store %arg3[%c0_15, %c0_16, %c0_17], %38 {strides = array<i32>} : memref<1x2x128xf32, #tpu.memory_space<vmem>>, vector<1x2x128xf32>,
    return
  }
  func.func @transform_0(%arg0: i32, %arg1: i32) -> (i32, i32, i32) {
    %c0_i32 = arith.constant 0 : i32
    %c0_i32_0 = arith.constant 0 : i32
    return %arg0, %arg1, %c0_i32 : i32, i32, i32
  }
  func.func @transform_1(%arg0: i32, %arg1: i32) -> (i32, i32, i32) {
    %c0_i32 = arith.constant 0 : i32
    %c0_i32_0 = arith.constant 0 : i32
    %c0_i32_1 = arith.constant 0 : i32
    return %arg0, %c0_i32, %c0_i32_0 : i32, i32, i32
  }
}

</mosaic_0001>

<bundles_post_ra>
// kernel: tpu_custom_call.1
= control target key start
LH: loop header
LB: loop body
LE: loop exit
PB: predicated region body
PF: predicated region fallthrough
CT: control target
= control target key end

     0   :  { %6 = vsyncpa [#allocation4], 0  ;;  %s862_s0 = inlined_call_operand.hbm [shape: f32[8,16,16], index: 0, kind: input, shape index: {}]   ;;  %s863_s1 = inlined_call_operand.hbm [shape: f32[1,2,128], index: 1, kind: output, shape index: {}]  }
   0x1   :  { %7 = vsyncpa [#allocation5], 0  ;;  %s570_s6 = smov [#allocation3]   ;;  %s522_s10 = scalar_lea.hbm %s862_s0, 2048 }
   0x2   :  { %s13_s7 = sshll.u32 %s570_s6, 4  ;;  %p523_p0 = scmp.ne.s32.totalorder %s862_s0, %s522_s10  ;;  %s14_s7 = int_to_ptr.vmem [resolvable:$true] %s13_s7 }
   0x3   :  { %p526_p1 = scmp.lt.u32.totalorder %s522_s10, %s862_s0 }
   0x5   :  { %p528_p2 = pnand %p526_p1, %p523_p0 }
   0x7   :  { %531 = shalt.err (!%p528_p2)
}
   0x8   :  { %s532_s15 = scalar_lea.vmem %s14_s7, 2048  ;;  %p537_p4 = scmp.lt.s32.totalorder %s14_s7, %s14_s7 }
   0x9   :  { %p533_p3 = scmp.ne.s32.totalorder %s14_s7, %s532_s15  ;;  %p538_p5 = scmp.lt.s32.totalorder %s532_s15, %s532_s15 }
   0xb   :  { %p539_p6 = por %p538_p5, %p537_p4 }
   0xd   :  { %p540_p7 = pnand %p539_p6, %p533_p3 }
   0xf   :  { %543 = shalt.err (!%p540_p7)
}
  0x10   :  { %s571_s16 = smov 128   ;;  %s572_s17 = smov 8  }
  0x11   :  { %19 = dma.hbm_to_vmem [thread:$0]  %s862_s0, 2048, %s14_s7, [#allocation4], %s571_s16, %s571_s16, %s572_s17  }
  0x12   :  { %566 = dma.done.wait [#allocation4], 2048  }
  0x13   :  { %567 = vsyncadd [#allocation4], 4294965248  ;;  %vm44_vm0 = vcmask 122880   ;;  %v599_v0 = vld [vmem:[#allocation3] sm:$0xff]  ;;  %v601_v1 = vld [vmem:[#allocation3 + $0x10] sm:$0xff]  ;;  %s573_s20 = smov 1  }
  0x14   :  { %300 = vrot.lane.b32.xlu0 %v599_v0, %s573_s20  ;;  %45 = vst.msk [vmem:[#allocation2] sm:$0x1] %vm44_vm0, %v599_v0  ;;  %304 = vrot.lane.b32.xlu1 %v601_v1, %s573_s20  ;;  %46 = vst.msk [vmem:[#allocation2 + $0x1] sm:$0x1] %vm44_vm0, %v601_v1  ;;  %v611_v2 = vld [vmem:[#allocation3 + $0x8] sm:$0xff]  ;;  %v613_v3 = vld [vmem:[#allocation3 + $0x20] sm:$0xff] }
  0x15   :  { %v615_v4 = vld [vmem:[#allocation3 + $0x18] sm:$0xff]  ;;  %47 = vst.msk [vmem:[#allocation2 + $0x2] sm:$0x1] %vm44_vm0, %v613_v3  ;;  %v619_v5 = vld [vmem:[#allocation3 + $0x30] sm:$0xff]  ;;  %v621_v6 = vld [vmem:[#allocation3 + $0x40] sm:$0xff]  ;;  %vm291_vm1 = vcmask 130055  }
  0x16   :  { %48 = vst.msk [vmem:[#allocation2 + $0x3] sm:$0x1] %vm44_vm0, %v619_v5  ;;  %49 = vst.msk [vmem:[#allocation2 + $0x4] sm:$0x1] %vm44_vm0, %v621_v6  ;;  %v627_v7 = vld [vmem:[#allocation3 + $0x50] sm:$0xff]  ;;  %v631_v8 = vld [vmem:[#allocation3 + $0x60] sm:$0xff] }
  0x17   :  { %50 = vst.msk [vmem:[#allocation2 + $0x5] sm:$0x1] %vm44_vm0, %v627_v7  ;;  %v633_v9 = vld [vmem:[#allocation3 + $0x70] sm:$0xff]  ;;  %51 = vst.msk [vmem:[#allocation2 + $0x6] sm:$0x1] %vm44_vm0, %v631_v8  ;;  %v643_v10 = vld [vmem:[#allocation3 + $0x28] sm:$0xff] }
  0x18   :  { %302 = vrot.lane.b32.xlu0 %v611_v2, %s573_s20  ;;  %306 = vrot.lane.b32.xlu1 %v615_v4, %s573_s20  ;;  %52 = vst.msk [vmem:[#allocation2 + $0x7] sm:$0x1] %vm44_vm0, %v633_v9  ;;  %v661_v14 = vld [vmem:[#allocation3 + $0x38] sm:$0xff]  ;;  %v667_v16 = vld [vmem:[#allocation3 + $0x48] sm:$0xff]  ;;  %v119_v21 = vrot.slane %v599_v0, 7  ;;  %v120_v22 = vrot.slane %v611_v2, 7 }
  0x19   :  { %v681_v18 = vld [vmem:[#allocation3 + $0x58] sm:$0xff]  ;;  %v687_v19 = vld [vmem:[#allocation3 + $0x68] sm:$0xff]  ;;  %vm118_vm2 = vcmask 1040384   ;;  %v122_v23 = vrot.slane %v601_v1, 7  ;;  %v123_v25 = vrot.slane %v615_v4, 7  ;;  %v125_v33 = vrot.slane %v613_v3, 7 }
  0x1a   :  { %v693_v20 = vld [vmem:[#allocation3 + $0x78] sm:$0xff]  ;;  %v121_v24 = vsel %vm118_vm2, %v119_v21, %v120_v22  ;;  %v159_v26 = vsub.f32 %v599_v0, %v119_v21  ;;  %v126_v34 = vrot.slane %v643_v10, 7  ;;  %vm207_vm3 = vcmask 1046528   ;;  %s574_s0 = smov 127   ;;  %s576_s25 = smov [#allocation6]  }
  0x1b   :  { %v645_v11 = vld [vmem:[#allocation2] sm:$0x1]  ;;  %v647_v12 = vld [vmem:[#allocation2 + $0x1] sm:$0x1]  ;;  %v160_v27 = vsub.f32 %v611_v2, %v121_v24  ;;  %v124_v28 = vsel %vm118_vm2, %v122_v23, %v123_v25  ;;  %v161_v30 = vsub.f32 %v601_v1, %v122_v23  ;;  %vm248_vm4 = vcmask 130048   ;;  %s500_s26 = sshll.u32 %s576_s25, 4  ;;  %s501_s26 = int_to_ptr.vmem [resolvable:$true] %s500_s26 }
  0x1c   :  { %292 = vst.msk [vmem:[#allocation2 - $0x7] sm:$0x80] %vm291_vm1, %v611_v2  ;;  %293 = vst.msk [vmem:[#allocation2 - $0x6] sm:$0x80] %vm291_vm1, %v615_v4  ;;  %308 = vrot.lane.b32.xlu0 %v613_v3, %s573_s20  ;;  %v655_v13 = vld [vmem:[#allocation2 + $0x2] sm:$0x1]  ;;  %310 = vrot.lane.b32.xlu1 %v643_v10, %s573_s20  ;;  %v175_v29 = vmul.f32 %v159_v26, %v159_v26  ;;  %v162_v32 = vsub.f32 %v615_v4, %v124_v28  ;;  %p549_p9 = scmp.lt.s32.totalorder %s501_s26, %s501_s26 }
  0x1d   :  { %294 = vst.msk [vmem:[#allocation2 - $0x5] sm:$0x80] %vm291_vm1, %v643_v10  ;;  %v663_v15 = vld [vmem:[#allocation2 + $0x3] sm:$0x1]  ;;  %v669_v17 = vld [vmem:[#allocation2 + $0x4] sm:$0x1]  ;;  %v176_v31 = vmul.f32 %v160_v27, %v160_v27  ;;  %v177_v40 = vmul.f32 %v161_v30, %v161_v30  ;;  %v127_v43 = vsel %vm118_vm2, %v125_v33, %v126_v34  ;;  %v163_v47 = vsub.f32 %v613_v3, %v125_v33 }
  0x1e   :  { %295 = vst.msk [vmem:[#allocation2 - $0x4] sm:$0x80] %vm291_vm1, %v661_v14  ;;  %296 = vst.msk [vmem:[#allocation2 - $0x3] sm:$0x80] %vm291_vm1, %v667_v16  ;;  %v208_v39 = vrot.slane %v175_v29, 1  ;;  %v178_v42 = vmul.f32 %v162_v32, %v162_v32  ;;  %vm250_vm5 = vcmask 129024   ;;  %v164_v55 = vsub.f32 %v643_v10, %v127_v43 }
  0x1f   :  { %v209_v41 = vrot.slane %v176_v31, 1  ;;  %v718_v51 = vld [vmem:[#allocation2 + $0x5] sm:$0x1]  ;;  %v211_v52 = vrot.slane %v177_v40, 1  ;;  %v128_v56 = vrot.slane %v619_v5, 7  ;;  %v129_v57 = vrot.slane %v661_v14, 7 }
  0x20   :  { %312 = vrot.lane.b32.xlu0 %v619_v5, %s573_s20  ;;  %314 = vrot.lane.b32.xlu1 %v661_v14, %s573_s20  ;;  %v212_v54 = vrot.slane %v178_v42, 1  ;;  %297 = vst.msk [vmem:[#allocation2 - $0x2] sm:$0x80] %vm291_vm1, %v681_v18  ;;  %v726_v59 = vld [vmem:[#allocation2 + $0x6] sm:$0x1]  ;;  %v179_v24 = vmul.f32 %v163_v47, %v163_v47  ;;  %v180_v25 = vmul.f32 %v164_v55, %v164_v55  ;;  %v131_v40 = vrot.slane %v621_v6, 7 }
  0x21   :  { %v210_v53 = vsel %vm207_vm3, %v208_v39, %v209_v41  ;;  %v251_v60 = vsel %vm250_vm5, %v209_v41, 0.0  ;;  %298 = vst.msk [vmem:[#allocation2 - $0x1] sm:$0x80] %vm291_vm1, %v687_v19  ;;  %v736_v22 = vld [vmem:[#allocation2 + $0x7] sm:$0x1]  ;;  %v130_v26 = vsel %vm118_vm2, %v128_v56, %v129_v57  ;;  %v132_v41 = vrot.slane %v667_v16, 7 }
  0x22   :  { %v249_v63 = vsel %vm248_vm4, %v210_v53, 0.0  ;;  %v213_v23 = vsel %vm207_vm3, %v211_v52, %v212_v54  ;;  %299 = vst.msk [vmem:[#allocation2] sm:$0x80] %vm291_vm1, %v693_v20  ;;  %v214_v34 = vrot.slane %v179_v24, 1  ;;  %vm444_vm6 = vcmask 121856   ;;  %s544_s27 = scalar_lea.vmem %s501_s26, 32 }
  0x23   :  { %v252_v28 = vadd.f32 %v251_v60, %v249_v63  ;;  %v253_v31 = vsel %vm248_vm4, %v213_v23, 0.0  ;;  %v133_v53 = vsel %vm118_vm2, %v131_v40, %v132_v41  ;;  %v167_v63 = vsub.f32 %v621_v6, %v131_v40  ;;  %p545_p8 = scmp.ne.s32.totalorder %s501_s26, %s544_s27  ;;  %p550_p10 = scmp.lt.s32.totalorder %s544_s27, %s544_s27 }
  0x24   :  { %316 = vrot.lane.b32.xlu0 %v621_v6, %s573_s20  ;;  %318 = vrot.lane.b32.xlu1 %v667_v16, %s573_s20 }
  0x25   :  { %v254_v39 = vadd.f32 %v253_v31, %v252_v28  ;;  %v62_v28 = vsub.f32 %v601_v1, %v647_v12  ;;  %p551_p11 = por %p550_p10, %p549_p9 }
  0x27   :  { %p552_p12 = pnand %p551_p11, %p545_p8 }
  0x28   :  { %320 = vrot.lane.b32.xlu0 %v627_v7, %s573_s20  ;;  %322 = vrot.lane.b32.xlu1 %v681_v18, %s573_s20 }
  0x2c   :  { %324 = vrot.lane.b32.xlu0 %v631_v8, %s573_s20  ;;  %326 = vrot.lane.b32.xlu1 %v687_v19, %s573_s20 }
  0x30   :  { %328 = vrot.lane.b32.xlu0 %v633_v9, %s573_s20  ;;  %330 = vrot.lane.b32.xlu1 %v693_v20, %s573_s20 }
  0x86   :  { %v301_v35 = vpop.permute.xlu0 %300  ;;  %v305_v36 = vpop.permute.xlu1 %304 }
  0x87   :  { %v348_v37 = vsub.f32 %v599_v0, %v301_v35  ;;  %v350_v38 = vsub.f32 %v601_v1, %v305_v36  ;;  %v215_v35 = vrot.slane %v180_v25, 1  ;;  %v165_v36 = vsub.f32 %v619_v5, %v128_v56 }
  0x89   :  { %v364_v44 = vmul.f32 %v348_v37, %v348_v37  ;;  %v366_v48 = vmul.f32 %v350_v38, %v350_v38  ;;  %v166_v37 = vsub.f32 %v661_v14, %v130_v26 }
  0x8a   :  { %v303_v45 = vpop.permute.xlu0 %302  ;;  %v307_v46 = vpop.permute.xlu1 %306 }
  0x8b   :  { %v349_v49 = vsub.f32 %v611_v2, %v303_v45  ;;  %396 = vrot.lane.b32.xlu0 %v364_v44, %s574_s0  ;;  %v351_v50 = vsub.f32 %v615_v4, %v307_v46  ;;  %v255_v44 = vsel %vm250_vm5, %v212_v54, 0.0 }
  0x8c   :  { %v256_v52 = vadd.f32 %v255_v44, %v254_v39 }
  0x8d   :  { %v365_v58 = vmul.f32 %v349_v49, %v349_v49  ;;  %v367_v2 = vmul.f32 %v351_v50, %v351_v50  ;;  %v757_v49 = vmul.f32 %v166_v37, %v166_v37  ;;  %v70_v37 = vmul.f32 %v62_v28, %v62_v28 }
  0x8e   :  { %v309_v61 = vpop.permute.xlu0 %308  ;;  %v311_v62 = vpop.permute.xlu1 %310 }
  0x8f   :  { %400 = vrot.lane.b32.xlu0 %v366_v48, %s574_s0  ;;  %398 = vrot.lane.b32.xlu1 %v365_v58, %s574_s0  ;;  %v352_v4 = vsub.f32 %v613_v3, %v309_v61  ;;  %v353_v21 = vsub.f32 %v643_v10, %v311_v62  ;;  %v181_v48 = vmul.f32 %v165_v36, %v165_v36  ;;  %v218_v62 = vrot.slane %v757_v49, 1 }
  0x91   :  { %v368_v27 = vmul.f32 %v352_v4, %v352_v4  ;;  %v369_v32 = vmul.f32 %v353_v21, %v353_v21  ;;  %v217_v61 = vrot.slane %v181_v48, 1  ;;  %v134_v4 = vrot.slane %v627_v7, 7 }
  0x92   :  { %v313_v29 = vpop.permute.xlu0 %312  ;;  %v315_v30 = vpop.permute.xlu1 %314  ;;  %v135_v21 = vrot.slane %v681_v18, 7 }
  0x93   :  { %402 = vrot.lane.b32.xlu1 %v367_v2, %s574_s0  ;;  %v354_v10 = vsub.f32 %v619_v5, %v313_v29  ;;  %404 = vrot.lane.b32.xlu0 %v368_v27, %s574_s0  ;;  %v355_v33 = vsub.f32 %v661_v14, %v315_v30  ;;  %v216_v14 = vsel %vm207_vm3, %v214_v34, %v215_v35  ;;  %v259_v29 = vsel %vm250_vm5, %v215_v35, 0.0 }
  0x94   :  { %v257_v56 = vsel %vm248_vm4, %v216_v14, 0.0  ;;  %v168_v2 = vsub.f32 %v667_v16, %v133_v53  ;;  %v61_v27 = vsub.f32 %v599_v0, %v645_v11  ;;  %v136_v0 = vsel %vm118_vm2, %v134_v4, %v135_v21 }
  0x95   :  { %v370_v38 = vmul.f32 %v354_v10, %v354_v10  ;;  %v371_v45 = vmul.f32 %v355_v33, %v355_v33  ;;  %v258_v24 = vadd.f32 %v257_v56, %v256_v52  ;;  %v183_v10 = vmul.f32 %v167_v63, %v167_v63 }
  0x96   :  { %v317_v42 = vpop.permute.xlu0 %316  ;;  %v319_v43 = vpop.permute.xlu1 %318  ;;  %v184_v33 = vmul.f32 %v168_v2, %v168_v2  ;;  %v63_v35 = vsub.f32 %v613_v3, %v655_v13  ;;  %v69_v36 = vmul.f32 %v61_v27, %v61_v27  ;;  %v64_v14 = vsub.f32 %v619_v5, %v663_v15 }
  0x97   :  { %406 = vrot.lane.b32.xlu1 %v369_v32, %s574_s0  ;;  %v356_v46 = vsub.f32 %v621_v6, %v317_v42  ;;  %408 = vrot.lane.b32.xlu0 %v370_v38, %s574_s0  ;;  %v357_v47 = vsub.f32 %v667_v16, %v319_v43  ;;  %v219_v32 = vsel %vm207_vm3, %v217_v61, %v218_v62  ;;  %v220_v43 = vrot.slane %v183_v10, 1 }
  0x98   :  { %v260_v34 = vadd.f32 %v259_v29, %v258_v24  ;;  %v261_v38 = vsel %vm248_vm4, %v219_v32, 0.0  ;;  %v169_v42 = vsub.f32 %v627_v7, %v134_v4  ;;  %v221_v44 = vrot.slane %v184_v33, 1 }
  0x99   :  { %v372_v50 = vmul.f32 %v356_v46, %v356_v46  ;;  %v373_v57 = vmul.f32 %v357_v47, %v357_v47  ;;  %v138_v46 = vrot.slane %v687_v19, 7  ;;  %v137_v47 = vrot.slane %v631_v8, 7 }
  0x9a   :  { %v321_v55 = vpop.permute.xlu0 %320  ;;  %v323_v54 = vpop.permute.xlu1 %322  ;;  %v262_v13 = vadd.f32 %v261_v38, %v260_v34  ;;  %v71_v49 = vmul.f32 %v63_v35, %v63_v35  ;;  %v79_v52 = vsel %vm44_vm0, %v70_v37, 0.0  ;;  %v185_v53 = vmul.f32 %v169_v42, %v169_v42 }
  0x9b   :  { %410 = vrot.lane.b32.xlu1 %v371_v45, %s574_s0  ;;  %v358_v58 = vsub.f32 %v627_v7, %v321_v55  ;;  %412 = vrot.lane.b32.xlu0 %v372_v50, %s574_s0  ;;  %v359_v60 = vsub.f32 %v681_v18, %v323_v54  ;;  %v170_v45 = vsub.f32 %v681_v18, %v136_v0  ;;  %v78_v50 = vsel %vm44_vm0, %v69_v36, 0.0 }
  0x9c   :  { %v263_v18 = vsel %vm250_vm5, %v218_v62, 0.0  ;;  %v222_v54 = vsel %vm207_vm3, %v220_v43, %v221_v44  ;;  %v139_v56 = vsel %vm118_vm2, %v137_v47, %v138_v46  ;;  %v65_v15 = vsub.f32 %v621_v6, %v669_v17 }
  0x9d   :  { %v374_v23 = vmul.f32 %v358_v58, %v358_v58  ;;  %v375_v30 = vmul.f32 %v359_v60, %v359_v60  ;;  %v186_v55 = vmul.f32 %v170_v45, %v170_v45  ;;  %v264_v5 = vadd.f32 %v263_v18, %v262_v13 }
  0x9e   :  { %v325_v25 = vpop.permute.xlu0 %324  ;;  %v327_v26 = vpop.permute.xlu1 %326  ;;  %v72_v58 = vmul.f32 %v64_v14, %v64_v14  ;;  %v81_v60 = vsel %vm44_vm0, %v71_v49, 0.0  ;;  %v265_v61 = vsel %vm248_vm4, %v222_v54, 0.0  ;;  %v171_v62 = vsub.f32 %v631_v8, %v137_v47 }
  0x9f   :  { %414 = vrot.lane.b32.xlu1 %v373_v57, %s574_s0  ;;  %v360_v16 = vsub.f32 %v631_v8, %v325_v25  ;;  %416 = vrot.lane.b32.xlu0 %v374_v23, %s574_s0  ;;  %v361_v31 = vsub.f32 %v687_v19, %v327_v26  ;;  %v80_v57 = vadd.f32 %v79_v52, %v78_v50  ;;  %v223_v2 = vrot.slane %v185_v53, 1 }
  0xa0   :  { %v172_v63 = vsub.f32 %v687_v19, %v139_v56  ;;  %v224_v4 = vrot.slane %v186_v55, 1  ;;  %v140_v21 = vrot.slane %v633_v9, 7  ;;  %v141_v23 = vrot.slane %v693_v20, 7 }
  0xa1   :  { %v376_v11 = vmul.f32 %v360_v16, %v360_v16  ;;  %v377_v39 = vmul.f32 %v361_v31, %v361_v31  ;;  %v82_v24 = vadd.f32 %v81_v60, %v80_v57  ;;  %v266_v25 = vadd.f32 %v265_v61, %v264_v5 }
  0xa2   :  { %v329_v1 = vpop.permute.xlu0 %328  ;;  %v331_v12 = vpop.permute.xlu1 %330  ;;  %v66_v6 = vsub.f32 %v627_v7, %v718_v51  ;;  %v73_v17 = vmul.f32 %v65_v15, %v65_v15  ;;  %v83_v26 = vsel %vm44_vm0, %v72_v58, 0.0  ;;  %v267_v27 = vsel %vm250_vm5, %v221_v44, 0.0 }
  0xa3   :  { %418 = vrot.lane.b32.xlu1 %v375_v30, %s574_s0  ;;  %v362_v40 = vsub.f32 %v633_v9, %v329_v1  ;;  %420 = vrot.lane.b32.xlu0 %v376_v11, %s574_s0  ;;  %v363_v41 = vsub.f32 %v693_v20, %v331_v12  ;;  %v187_v28 = vmul.f32 %v171_v62, %v171_v62 }
  0xa4   :  { %v188_v29 = vmul.f32 %v172_v63, %v172_v63  ;;  %v225_v19 = vsel %vm207_vm3, %v223_v2, %v224_v4  ;;  %v142_v30 = vsel %vm118_vm2, %v140_v21, %v141_v23  ;;  %v84_v16 = vadd.f32 %v83_v26, %v82_v24 }
  0xa5   :  { %v378_v3 = vmul.f32 %v362_v40, %v362_v40  ;;  %v379_v48 = vmul.f32 %v363_v41, %v363_v41  ;;  %v268_v31 = vadd.f32 %v267_v27, %v266_v25  ;;  %v67_v32 = vsub.f32 %v631_v8, %v726_v59 }
  0xa6   :  { %v74_v10 = vmul.f32 %v66_v6, %v66_v6  ;;  %v85_v33 = vsel %vm44_vm0, %v73_v17, 0.0  ;;  %v269_v7 = vsel %vm248_vm4, %v225_v19, 0.0  ;;  %v173_v51 = vsub.f32 %v633_v9, %v140_v21 }
  0xa7   :  { %422 = vrot.lane.b32.xlu1 %v377_v39, %s574_s0  ;;  %424 = vrot.lane.b32.xlu0 %v378_v3, %s574_s0  ;;  %v174_v0 = vsub.f32 %v693_v20, %v142_v30  ;;  %v226_v11 = vrot.slane %v187_v28, 1  ;;  %v227_v34 = vrot.slane %v188_v29, 1  ;;  %v86_v1 = vadd.f32 %v85_v33, %v84_v16 }
  0xa8   :  { %v270_v12 = vadd.f32 %v269_v7, %v268_v31  ;;  %v68_v35 = vsub.f32 %v633_v9, %v736_v22  ;;  %v75_v36 = vmul.f32 %v67_v32, %v67_v32  ;;  %v87_v37 = vsel %vm44_vm0, %v74_v10, 0.0 }
  0xa9   :  { %v271_v8 = vsel %vm250_vm5, %v224_v4, 0.0  ;;  %v189_v59 = vmul.f32 %v173_v51, %v173_v51  ;;  %v190_v38 = vmul.f32 %v174_v0, %v174_v0  ;;  %v228_v39 = vsel %vm207_vm3, %v226_v11, %v227_v34 }
  0xaa   :  { %v88_v40 = vadd.f32 %v87_v37, %v86_v1  ;;  %v272_v41 = vadd.f32 %v271_v8, %v270_v12  ;;  %v76_v42 = vmul.f32 %v68_v35, %v68_v35  ;;  %v89_v20 = vsel %vm44_vm0, %v75_v36, 0.0 }
  0xab   :  { %426 = vrot.lane.b32.xlu1 %v379_v48, %s574_s0  ;;  %v273_v43 = vsel %vm248_vm4, %v228_v39, 0.0  ;;  %v229_v44 = vrot.slane %v189_v59, 1  ;;  %v230_v45 = vrot.slane %v190_v38, 1  ;;  %v275_v13 = vsel %vm250_vm5, %v227_v34, 0.0 }
  0xac   :  { %v90_v3 = vadd.f32 %v89_v20, %v88_v40  ;;  %v274_v9 = vadd.f32 %v273_v43, %v272_v41  ;;  %v91_v22 = vsel %vm44_vm0, %v76_v42, 0.0  ;;  %v575_v41 = vmov 0.0  }
  0xad   :  { %v231_v46 = vsel %vm207_vm3, %v229_v44, %v230_v45  ;;  %v279_v50 = vsel %vm250_vm5, %v230_v45, 0.0  ;;  %43 = vst [vmem:[#allocation6] sm:$0x3] %v575_v41 }
  0xae   :  { %v92_v47 = vadd.f32 %v91_v22, %v90_v3  ;;  %v276_v14 = vadd.f32 %v275_v13, %v274_v9  ;;  %v277_v48 = vsel %vm248_vm4, %v231_v46, 0.0 }
  0xb0   :  { %v278_v49 = vadd.f32 %v277_v48, %v276_v14 }
  0xb2   :  { %v280_v52 = vadd.f32 %v279_v50, %v278_v49 }
  0xc6   :  { %93 = vadd.xlane.f32.xlu0 %v92_v47 }
  0xcf   :  { %281 = vadd.xlane.f32.xlu1 %v280_v52 }
  0xfd   :  { %v397_v18 = vpop.permute.xlu0 %396 }
  0xfe   :  { %v445_v54 = vsel %vm444_vm6, %v397_v18, 0.0 }
 0x101   :  { %v399_v53 = vpop.permute.xlu1 %398  ;;  %v401_v55 = vpop.permute.xlu0 %400 }
 0x102   :  { %v446_v56 = vsel %vm444_vm6, %v399_v53, 0.0  ;;  %v448_v5 = vsel %vm444_vm6, %v401_v55, 0.0 }
 0x103   :  { %v447_v57 = vadd.f32 %v446_v56, %v445_v54 }
 0x105   :  { %v449_v15 = vadd.f32 %v448_v5, %v447_v57  ;;  %v403_v58 = vpop.permute.xlu1 %402  ;;  %v405_v60 = vpop.permute.xlu0 %404  ;;  %v485_v57 = vlaneseq }
 0x106   :  { %v450_v61 = vsel %vm444_vm6, %v403_v58, 0.0  ;;  %v452_v62 = vsel %vm444_vm6, %v405_v60, 0.0 }
 0x107   :  { %v451_v63 = vadd.f32 %v450_v61, %v449_v15  ;;  %v486_v5 = vshrl.u32 %v485_v57, 7  ;;  %v487_v15 = vld [vmem:[#allocation6] sm:$0x3] }
 0x109   :  { %v453_v2 = vadd.f32 %v452_v62, %v451_v63  ;;  %v407_v4 = vpop.permute.xlu1 %406  ;;  %v409_v21 = vpop.permute.xlu0 %408  ;;  %vm488_vm7 = vcmp.eq.s32.totalorder %v486_v5, 0 }
 0x10a   :  { %v454_v23 = vsel %vm444_vm6, %v407_v4, 0.0  ;;  %v456_v24 = vsel %vm444_vm6, %v409_v21, 0.0 }
 0x10b   :  { %v455_v25 = vadd.f32 %v454_v23, %v453_v2 }
 0x10d   :  { %v457_v6 = vadd.f32 %v456_v24, %v455_v25  ;;  %v411_v17 = vpop.permute.xlu1 %410  ;;  %v413_v26 = vpop.permute.xlu0 %412 }
 0x10e   :  { %v458_v27 = vsel %vm444_vm6, %v411_v17, 0.0  ;;  %v460_v28 = vsel %vm444_vm6, %v413_v26, 0.0 }
 0x10f   :  { %v459_v29 = vadd.f32 %v458_v27, %v457_v6 }
 0x111   :  { %v461_v19 = vadd.f32 %v460_v28, %v459_v29  ;;  %v415_v30 = vpop.permute.xlu1 %414  ;;  %v417_v16 = vpop.permute.xlu0 %416 }
 0x112   :  { %v462_v31 = vsel %vm444_vm6, %v415_v30, 0.0  ;;  %v464_v32 = vsel %vm444_vm6, %v417_v16, 0.0 }
 0x113   :  { %v463_v10 = vadd.f32 %v462_v31, %v461_v19 }
 0x115   :  { %v465_v33 = vadd.f32 %v464_v32, %v463_v10  ;;  %v419_v7 = vpop.permute.xlu1 %418  ;;  %v421_v51 = vpop.permute.xlu0 %420 }
 0x116   :  { %v466_v0 = vsel %vm444_vm6, %v419_v7, 0.0  ;;  %v468_v11 = vsel %vm444_vm6, %v421_v51, 0.0 }
 0x117   :  { %v467_v34 = vadd.f32 %v466_v0, %v465_v33 }
 0x119   :  { %v469_v1 = vadd.f32 %v468_v11, %v467_v34  ;;  %v423_v12 = vpop.permute.xlu1 %422  ;;  %v425_v35 = vpop.permute.xlu0 %424 }
 0x11a   :  { %v470_v36 = vsel %vm444_vm6, %v423_v12, 0.0  ;;  %v472_v37 = vsel %vm444_vm6, %v425_v35, 0.0 }
 0x11b   :  { %v471_v8 = vadd.f32 %v470_v36, %v469_v1 }
 0x11d   :  { %v473_v59 = vadd.f32 %v472_v37, %v471_v8  ;;  %v427_v38 = vpop.permute.xlu1 %426 }
 0x11e   :  { %v474_v39 = vsel %vm444_vm6, %v427_v38, 0.0 }
 0x11f   :  { %v475_v40 = vadd.f32 %v474_v39, %v473_v59 }
 0x121   :  { %476 = vadd.xlane.f32.xlu0 %v475_v40 }
 0x153   :  { %v94_v42 = vpop.xlane.xlu0 %93 }
 0x154   :  { %v95_v20 = vrot.slane %v94_v42, 4 }
 0x156   :  { %v96_v43 = vadd.f32 %v95_v20, %v94_v42 }
 0x158   :  { %v97_v44 = vrot.slane %v96_v43, 2 }
 0x15a   :  { %v98_v45 = vadd.f32 %v97_v44, %v96_v43 }
 0x15c   :  { %v282_v3 = vpop.xlane.xlu1 %281  ;;  %v99_v9 = vrot.slane %v98_v45, 1 }
 0x15d   :  { %v283_v22 = vrot.slane %v282_v3, 4 }
 0x15e   :  { %v100_v13 = vadd.f32 %v99_v9, %v98_v45 }
 0x15f   :  { %v284_v46 = vadd.f32 %v283_v22, %v282_v3 }
 0x160   :  { %509 = vpush %v100_v13 }
 0x161   :  { %v285_v47 = vrot.slane %v284_v46, 2 }
 0x163   :  { %v286_v14 = vadd.f32 %v285_v47, %v284_v46 }
 0x165   :  { %v287_v48 = vrot.slane %v286_v14, 1 }
 0x167   :  { %v288_v49 = vadd.f32 %v287_v48, %v286_v14 }
 0x169   :  { %511 = vpush %v288_v49 }
 0x191   :  { %s510_s21 = spop %509 }
 0x19a   :  { %s512_s22 = spop %511 }
 0x19b   :  { %s290_s23 = sadd.f32 %s512_s22, %s510_s21 }
 0x19d   :  { %v489_v58 = vstv %s290_s23 }
 0x1ae   :  { %v477_v50 = vpop.xlane.xlu0 %476 }
 0x1af   :  { %v478_v52 = vrot.slane %v477_v50, 4 }
 0x1b1   :  { %v479_v18 = vadd.f32 %v478_v52, %v477_v50 }
 0x1b3   :  { %v480_v53 = vrot.slane %v479_v18, 2 }
 0x1b5   :  { %v481_v55 = vadd.f32 %v480_v53, %v479_v18 }
 0x1b7   :  { %v482_v54 = vrot.slane %v481_v55, 1 }
 0x1b9   :  { %v483_v56 = vadd.f32 %v482_v54, %v481_v55 }
 0x1bb   :  { %513 = vpush %v483_v56 }
 0x1ec   :  { %s514_s24 = spop %513 }
 0x1ed   :  { %v490_v60 = vstv %s514_s24 }
 0x1ee   :  { %v491_v61 = vsel %vm488_vm7, %v489_v58, %v490_v60 }
 0x1ef   :  { %v492_v62 = vadd.f32 %v491_v61, %v487_v15 }
 0x1f1   :  { %493 = vst [vmem:[#allocation6] sm:$0x3] %v492_v62 }
 0x1f2   :  { %555 = shalt.err (!%p552_p12)
}
 0x1f3   :  { %s556_s30 = scalar_lea.hbm %s863_s1, 32 }
 0x1f4   :  { %p557_p13 = scmp.ne.s32.totalorder %s863_s1, %s556_s30  ;;  %p560_p0 = scmp.lt.u32.totalorder %s556_s30, %s863_s1 }
 0x1f6   :  { %p562_p1 = pnand %p560_p0, %p557_p13 }
 0x1f8   :  { %565 = shalt.err (!%p562_p1)
}
 0x1f9   :  { %503 = dma.vmem_to_hbm [thread:$0]  %s501_s26, 32, %s863_s1, [#allocation5]  }
 0x1fa   :  { %568 = dma.done.wait [#allocation5], 32  }
 0x1fb   :  { %569 = vsyncadd [#allocation5], 4294967264 }
 0x1fc   :  { %507 = vsyncpa [#allocation4], 1 }
 0x1fd   :  { %508 = vsyncpa [#allocation5], 1 }

</bundles_post_ra>
